<compile_context>
chip_gen: v7x
topology: tpu7x:2x2x1
jax: 0.10.0
libtpu: 0.0.40
codegen_flags: <defaults>
</compile_context>

<pallas_src>
import math

import jax
import jax.numpy as jnp
from jax.experimental import pallas as pl
from jax.experimental.pallas import tpu as pltpu


def _round_up(x, m):
    return (x + m - 1) // m * m


def _time_pos_emb_kernel(t_ref, freqs_ref, w1c_ref, w1s_ref, b1_ref,
                         w2_ref, b2_ref, o_ref):
    # t_ref: (TILE_N, 1) f32 ; freqs_ref: (1, HALF) f32
    args = t_ref[...] * freqs_ref[...]                        # (TILE_N, HALF) f32
    c = jnp.cos(args)
    s = jnp.sin(args)

    # First Linear, split over the cos/sin halves (no lane concat).
    # bf16 MXU inputs, f32 accumulation; bias add in f32.
    h = (
        jnp.dot(c.astype(w1c_ref.dtype), w1c_ref[...],
                preferred_element_type=jnp.float32)
        + jnp.dot(s.astype(w1s_ref.dtype), w1s_ref[...],
                  preferred_element_type=jnp.float32)
        + b1_ref[...]
    )                                                          # (TILE_N, H) f32

    # SiLU in f32; plain VPU divide (keep EUP load to the single exp).
    h = h * (1.0 / (1.0 + jnp.exp(-h)))

    # Second Linear (output feature axis is pre-padded to a multiple of 128
    # in the wrapper, so this store is lane-dense / unmasked).
    o_ref[...] = (
        jnp.dot(h.astype(w2_ref.dtype), w2_ref[...],
                preferred_element_type=jnp.float32)
        + b2_ref[...]
    )


def sinusoidal_time_pos_embedding(t, w1, b1, w2, b2,
                                  frequency_embedding_size=256,
                                  max_period=10000,
                                  tile_n=1024,
                                  matmul_dtype=jnp.bfloat16):
    """t: [B, S] float timesteps -> [B, S, d] (matches PyTorch forward)."""
    B, S = t.shape
    N = B * S
    half = frequency_embedding_size // 2
    hidden = w1.shape[1]
    d = w2.shape[1]

    # Odd frequency_embedding_size appends a zero column in PyTorch; that zero
    # column only multiplies W1's last row, so dropping that row is equivalent.
    w1_eff = w1[: 2 * half]
    w1_cos = w1_eff[:half].astype(matmul_dtype)        # (half, hidden)
    w1_sin = w1_eff[half:].astype(matmul_dtype)        # (half, hidden)

    # Lane-dense output: pad the output feature axis to a multiple of 128 so
    # the per-row output store is an unmasked vst.  Pad W2 columns / b2 with
    # zeros; the extra columns are exactly zero and sliced off below.
    d_pad = max(128, _round_up(d, 128))
    w2_c = w2.astype(matmul_dtype)                     # (hidden, d)
    b2_r = b2.reshape(1, d).astype(jnp.float32)
    if d_pad != d:
        w2_c = jnp.pad(w2_c, ((0, 0), (0, d_pad - d)))
        b2_r = jnp.pad(b2_r, ((0, 0), (0, d_pad - d)))
    b1_r = b1.reshape(1, hidden).astype(jnp.float32)

    freqs = jnp.exp(
        -math.log(max_period) * jnp.arange(half, dtype=jnp.float32) / half
    ).reshape(1, half)

    # Row tiling: multiple of 8, capped at tile_n; pad N up so blocks are full.
    tile = min(tile_n, _round_up(N, 8))
    tile = _round_up(tile, 8)
    n_pad = _round_up(N, tile)
    grid = (n_pad // tile,)

    t_flat = t.reshape(N, 1).astype(jnp.float32)
    if n_pad != N:
        t_flat = jnp.pad(t_flat, ((0, n_pad - N), (0, 0)))

    cost = pl.CostEstimate(
        flops=2 * n_pad * (2 * half * hidden + hidden * d_pad),
        transcendentals=n_pad * (2 * half + hidden),   # cos + sin + exp
        bytes_accessed=(4 * n_pad * (1 + d_pad)
                        + 2 * (2 * half * hidden + hidden * d_pad)
                        + 4 * (hidden + d_pad + half)),
    )

    out = pl.pallas_call(
        _time_pos_emb_kernel,
        out_shape=jax.ShapeDtypeStruct((n_pad, d_pad), jnp.float32),
        grid_spec=pltpu.PrefetchScalarGridSpec(
            num_scalar_prefetch=0,
            grid=grid,
            in_specs=[
                pl.BlockSpec((tile, 1), lambda i: (i, 0)),         # t (tiled)
                pl.BlockSpec((1, half), lambda i: (0, 0)),         # freqs (resident)
                pl.BlockSpec((half, hidden), lambda i: (0, 0)),    # W1_cos
                pl.BlockSpec((half, hidden), lambda i: (0, 0)),    # W1_sin
                pl.BlockSpec((1, hidden), lambda i: (0, 0)),       # b1
                pl.BlockSpec((hidden, d_pad), lambda i: (0, 0)),   # W2 (padded cols)
                pl.BlockSpec((1, d_pad), lambda i: (0, 0)),        # b2 (padded)
            ],
            out_specs=pl.BlockSpec((tile, d_pad), lambda i: (i, 0)),
        ),
        compiler_params=pltpu.CompilerParams(
            dimension_semantics=("parallel",),
            vmem_limit_bytes=32 * 1024 * 1024,
        ),
        cost_estimate=cost,
    )(t_flat, freqs, w1_cos, w1_sin, b1_r, w2_c, b2_r)

    return out[:N, :d].reshape(B, S, d)


def _reference(t, w1, b1, w2, b2, frequency_embedding_size=256, max_period=10000):
    half = frequency_embedding_size // 2
    freqs = jnp.exp(-math.log(max_period) * jnp.arange(half, dtype=jnp.float32) / half)
    args = t[:, :, None].astype(jnp.float32) * freqs[None, None, :]
    emb = jnp.concatenate([jnp.cos(args), jnp.sin(args)], axis=-1)
    h = emb @ w1 + b1
    h = h * jax.nn.sigmoid(h)
    return h @ w2 + b2


if __name__ == "__main__":
    B, S = 2, 8
    FREQ = 256
    HIDDEN = 128
    D = 64

    key = jax.random.PRNGKey(0)
    k_t, k_w1, k_b1, k_w2, k_b2 = jax.random.split(key, 5)

    # deterministic synthetic parameters (shapes from the nn.Linear layers)
    w1 = jax.random.normal(k_w1, (FREQ, HIDDEN), jnp.float32) * 0.02
    b1 = jax.random.normal(k_b1, (HIDDEN,), jnp.float32) * 0.02
    w2 = jax.random.normal(k_w2, (HIDDEN, D), jnp.float32) * 0.02
    b2 = jax.random.normal(k_b2, (D,), jnp.float32) * 0.02

    # timesteps: [B, S]
    t = jax.random.uniform(k_t, (B, S), jnp.float32, 0.0, 1000.0)

    out = sinusoidal_time_pos_embedding(t, w1, b1, w2, b2,
                                        frequency_embedding_size=FREQ)
    out = jax.block_until_ready(out)

    ref = _reference(t, w1, b1, w2, b2, frequency_embedding_size=FREQ)
    assert out.shape == (B, S, D), out.shape
    # bf16 matmul inputs (f32 accumulation) -> slightly looser tolerance vs f32 ref.
    assert jnp.allclose(out, ref, atol=5e-3, rtol=1e-2), (
        "mismatch vs reference, max abs diff = %g" % float(jnp.max(jnp.abs(out - ref)))
    )

    print("KERNEL_OK")
</pallas_src>

<mosaic_0001>
module attributes {stable_mosaic.version = 11 : i64} {
  func.func @_time_pos_emb_kernel(%arg0: i32, %arg1: memref<16x1xf32, #tpu.memory_space<vmem>>, %arg2: memref<1x128xf32, #tpu.memory_space<vmem>>, %arg3: memref<128x128xbf16, #tpu.memory_space<vmem>>, %arg4: memref<128x128xbf16, #tpu.memory_space<vmem>>, %arg5: memref<1x128xf32, #tpu.memory_space<vmem>>, %arg6: memref<128x128xbf16, #tpu.memory_space<vmem>>, %arg7: memref<1x128xf32, #tpu.memory_space<vmem>>, %arg8: memref<16x128xf32, #tpu.memory_space<vmem>>) attributes {dimension_semantics = [#tpu.dimension_semantics<parallel>], iteration_bounds = array<i64: 1>, scalar_prefetch = 0 : i64, scratch_operands = 0 : i64, tpu.core_type = #tpu.core_type<tc>, window_params = [{transform_indices = @transform_0, window_bounds = array<i64: 16, 1>}, {pipeline_mode = #tpu.pipeline_mode<synchronous>, transform_indices = @transform_1, window_bounds = array<i64: 1, 128>}, {pipeline_mode = #tpu.pipeline_mode<synchronous>, transform_indices = @transform_2, window_bounds = array<i64: 128, 128>}, {pipeline_mode = #tpu.pipeline_mode<synchronous>, transform_indices = @transform_3, window_bounds = array<i64: 128, 128>}, {pipeline_mode = #tpu.pipeline_mode<synchronous>, transform_indices = @transform_4, window_bounds = array<i64: 1, 128>}, {pipeline_mode = #tpu.pipeline_mode<synchronous>, transform_indices = @transform_5, window_bounds = array<i64: 128, 128>}, {pipeline_mode = #tpu.pipeline_mode<synchronous>, transform_indices = @transform_6, window_bounds = array<i64: 1, 128>}, {transform_indices = @transform_7, window_bounds = array<i64: 16, 128>}]} {
    %c0 = arith.constant 0 : index
    %c0_0 = arith.constant 0 : index
    %0 = vector.load %arg1[%c0, %c0_0] : memref<16x1xf32, #tpu.memory_space<vmem>>, vector<16x1xf32>
    %c0_1 = arith.constant 0 : index
    %c0_2 = arith.constant 0 : index
    %1 = vector.load %arg2[%c0_1, %c0_2] : memref<1x128xf32, #tpu.memory_space<vmem>>, vector<1x128xf32>
    %2 = vector.broadcast %0 : vector<16x1xf32> to vector<16x128xf32>
    %3 = vector.broadcast %1 : vector<1x128xf32> to vector<16x128xf32>
    %4 = arith.mulf %2, %3 : vector<16x128xf32>
    %5 = math.cos %4 : vector<16x128xf32>
    %6 = math.sin %4 : vector<16x128xf32>
    %7 = arith.truncf %5 : vector<16x128xf32> to vector<16x128xbf16>
    %c0_3 = arith.constant 0 : index
    %c0_4 = arith.constant 0 : index
    %8 = vector.load %arg3[%c0_3, %c0_4] : memref<128x128xbf16, #tpu.memory_space<vmem>>, vector<128x128xbf16>
    %cst = arith.constant dense<0.000000e+00> : vector<16x128xf32>
    %9 = tpu.matmul %7, %8, %cst {dimension_numbers = #tpu.dot_dimension_numbers<[1], [0], [0], [1], [0, 0, 1, 1], [], []>} : vector<16x128xbf16>, vector<128x128xbf16>, vector<16x128xf32> -> vector<16x128xf32>
    %10 = arith.truncf %6 : vector<16x128xf32> to vector<16x128xbf16>
    %c0_5 = arith.constant 0 : index
    %c0_6 = arith.constant 0 : index
    %11 = vector.load %arg4[%c0_5, %c0_6] : memref<128x128xbf16, #tpu.memory_space<vmem>>, vector<128x128xbf16>
    %cst_7 = arith.constant dense<0.000000e+00> : vector<16x128xf32>
    %12 = tpu.matmul %10, %11, %cst_7 {dimension_numbers = #tpu.dot_dimension_numbers<[1], [0], [0], [1], [0, 0, 1, 1], [], []>} : vector<16x128xbf16>, vector<128x128xbf16>, vector<16x128xf32> -> vector<16x128xf32>
    %13 = arith.addf %9, %12 : vector<16x128xf32>
    %c0_8 = arith.constant 0 : index
    %c0_9 = arith.constant 0 : index
    %14 = vector.load %arg5[%c0_8, %c0_9] : memref<1x128xf32, #tpu.memory_space<vmem>>, vector<1x128xf32>
    %15 = vector.broadcast %14 : vector<1x128xf32> to vector<16x128xf32>
    %16 = arith.addf %13, %15 : vector<16x128xf32>
    %cst_10 = arith.constant 0.000000e+00 : f32
    %17 = vector.broadcast %cst_10 : f32 to vector<16x128xf32>
    %18 = arith.subf %17, %16 : vector<16x128xf32>
    %19 = math.exp %18 : vector<16x128xf32>
    %cst_11 = arith.constant 1.000000e+00 : f32
    %20 = vector.broadcast %cst_11 : f32 to vector<16x128xf32>
    %21 = arith.addf %20, %19 : vector<16x128xf32>
    %cst_12 = arith.constant 1.000000e+00 : f32
    %22 = vector.broadcast %cst_12 : f32 to vector<16x128xf32>
    %23 = arith.divf %22, %21 : vector<16x128xf32>
    %24 = arith.mulf %16, %23 : vector<16x128xf32>
    %25 = arith.truncf %24 : vector<16x128xf32> to vector<16x128xbf16>
    %c0_13 = arith.constant 0 : index
    %c0_14 = arith.constant 0 : index
    %26 = vector.load %arg6[%c0_13, %c0_14] : memref<128x128xbf16, #tpu.memory_space<vmem>>, vector<128x128xbf16>
    %cst_15 = arith.constant dense<0.000000e+00> : vector<16x128xf32>
    %27 = tpu.matmul %25, %26, %cst_15 {dimension_numbers = #tpu.dot_dimension_numbers<[1], [0], [0], [1], [0, 0, 1, 1], [], []>} : vector<16x128xbf16>, vector<128x128xbf16>, vector<16x128xf32> -> vector<16x128xf32>
    %c0_16 = arith.constant 0 : index
    %c0_17 = arith.constant 0 : index
    %28 = vector.load %arg7[%c0_16, %c0_17] : memref<1x128xf32, #tpu.memory_space<vmem>>, vector<1x128xf32>
    %29 = vector.broadcast %28 : vector<1x128xf32> to vector<16x128xf32>
    %30 = arith.addf %27, %29 : vector<16x128xf32>
    %c0_18 = arith.constant 0 : index
    %c0_19 = arith.constant 0 : index
    %31 = vector.load %arg8[%c0_18, %c0_19] : memref<16x128xf32, #tpu.memory_space<vmem>>, vector<16x128xf32>
    tpu.vector_store %arg8[%c0_18, %c0_19], %30 {strides = array<i32>} : memref<16x128xf32, #tpu.memory_space<vmem>>, vector<16x128xf32>,
    return
  }
  func.func @transform_0(%arg0: i32) -> (i32, i32) {
    %c0_i32 = arith.constant 0 : i32
    %c0_i32_0 = arith.constant 0 : i32
    return %arg0, %c0_i32 : i32, i32
  }
  func.func @transform_1(%arg0: i32) -> (i32, i32) {
    %c0_i32 = arith.constant 0 : i32
    %c0_i32_0 = arith.constant 0 : i32
    %c0_i32_1 = arith.constant 0 : i32
    return %c0_i32, %c0_i32_0 : i32, i32
  }
  func.func @transform_2(%arg0: i32) -> (i32, i32) {
    %c0_i32 = arith.constant 0 : i32
    %c0_i32_0 = arith.constant 0 : i32
    %c0_i32_1 = arith.constant 0 : i32
    return %c0_i32, %c0_i32_0 : i32, i32
  }
  func.func @transform_3(%arg0: i32) -> (i32, i32) {
    %c0_i32 = arith.constant 0 : i32
    %c0_i32_0 = arith.constant 0 : i32
    %c0_i32_1 = arith.constant 0 : i32
    return %c0_i32, %c0_i32_0 : i32, i32
  }
  func.func @transform_4(%arg0: i32) -> (i32, i32) {
    %c0_i32 = arith.constant 0 : i32
    %c0_i32_0 = arith.constant 0 : i32
    %c0_i32_1 = arith.constant 0 : i32
    return %c0_i32, %c0_i32_0 : i32, i32
  }
  func.func @transform_5(%arg0: i32) -> (i32, i32) {
    %c0_i32 = arith.constant 0 : i32
    %c0_i32_0 = arith.constant 0 : i32
    %c0_i32_1 = arith.constant 0 : i32
    return %c0_i32, %c0_i32_0 : i32, i32
  }
  func.func @transform_6(%arg0: i32) -> (i32, i32) {
    %c0_i32 = arith.constant 0 : i32
    %c0_i32_0 = arith.constant 0 : i32
    %c0_i32_1 = arith.constant 0 : i32
    return %c0_i32, %c0_i32_0 : i32, i32
  }
  func.func @transform_7(%arg0: i32) -> (i32, i32) {
    %c0_i32 = arith.constant 0 : i32
    %c0_i32_0 = arith.constant 0 : i32
    return %arg0, %c0_i32 : i32, i32
  }
}

</mosaic_0001>

<bundles_post_ra>
// kernel: tpu_custom_call.1
= control target key start
LH: loop header
LB: loop body
LE: loop exit
PB: predicated region body
PF: predicated region fallthrough
CT: control target
= control target key end

     0   :  { %12 = vsyncpa [#allocation3], 0  ;;  %s1405_s0 = inlined_call_operand.vmem [shape: f32[16,1], index: 0, kind: input, shape index: {}]   ;;  %s1406_s1 = inlined_call_operand.vmem [shape: f32[1,128], index: 1, kind: input, shape index: {}]   ;;  %s1407_s2 = inlined_call_operand.hbm [shape: bf16[128,128], index: 2, kind: input, shape index: {}]   ;;  %s1408_s3 = inlined_call_operand.hbm [shape: bf16[128,128], index: 3, kind: input, shape index: {}]   ;;  %s1409_s4 = inlined_call_operand.vmem [shape: f32[1,128], index: 4, kind: input, shape index: {}]   ;;  %s1410_s5 = inlined_call_operand.hbm [shape: bf16[128,128], index: 5, kind: input, shape index: {}]   ;;  %s1411_s6 = inlined_call_operand.vmem [shape: f32[1,128], index: 6, kind: input, shape index: {}]   ;;  %s1412_s7 = inlined_call_operand.hbm [shape: f32[16,128], index: 7, kind: output, shape index: {}]  }
   0x1   :  { %13 = vsyncpa [#allocation6], 0 }
   0x2   :  { %14 = vsyncpa [#allocation4], 0  ;;  %s1162_s24 = smov [#allocation5]   ;;  %s1163_s26 = smov [#allocation2]  }
   0x3   :  { %s36_s25 = sshll.u32 %s1162_s24, 4  ;;  %s24_s27 = sshll.u32 %s1163_s26, 4  ;;  %s37_s25 = int_to_ptr.vmem [resolvable:$true] %s36_s25  ;;  %s1219_s27 = int_to_ptr.vmem [resolvable:$true] %s24_s27 }
   0x4   :  { %s1068_s30 = scalar_lea.hbm %s1408_s3, 1024 }
   0x5   :  { %p1069_p0 = scmp.ne.s32.totalorder %s1408_s3, %s1068_s30  ;;  %p1072_p1 = scmp.lt.u32.totalorder %s1068_s30, %s1408_s3 }
   0x7   :  { %p1074_p2 = pnand %p1072_p1, %p1069_p0 }
   0x9   :  { %1077 = shalt.err (!%p1074_p2)
}
   0xa   :  { %s1078_s12 = scalar_lea.vmem %s37_s25, 1024  ;;  %p1083_p4 = scmp.lt.s32.totalorder %s37_s25, %s37_s25 }
   0xb   :  { %p1079_p3 = scmp.ne.s32.totalorder %s37_s25, %s1078_s12  ;;  %p1084_p5 = scmp.lt.s32.totalorder %s1078_s12, %s1078_s12 }
   0xd   :  { %p1085_p6 = por %p1084_p5, %p1083_p4 }
   0xf   :  { %p1086_p7 = pnand %p1085_p6, %p1079_p3 }
  0x11   :  { %1089 = shalt.err (!%p1086_p7)
}
  0x12   :  { %s1164_s13 = smov 64   ;;  %s1165_s14 = smov 4  }
  0x13   :  { %42 = dma.hbm_to_vmem [thread:$0]  %s1408_s3, 1024, %s37_s25, [#allocation6], %s1164_s13, %s1164_s13, %s1165_s14  }
  0x14   :  { %s1090_s19 = scalar_lea.hbm %s1407_s2, 1024 }
  0x15   :  { %p1091_p8 = scmp.ne.s32.totalorder %s1407_s2, %s1090_s19  ;;  %p1094_p9 = scmp.lt.u32.totalorder %s1090_s19, %s1407_s2 }
  0x17   :  { %p1096_p10 = pnand %p1094_p9, %p1091_p8 }
  0x19   :  { %1099 = shalt.err (!%p1096_p10)
}
  0x1a   :  { %s1100_s24 = scalar_lea.vmem %s1219_s27, 1024  ;;  %p1105_p12 = scmp.lt.s32.totalorder %s1219_s27, %s1219_s27 }
  0x1b   :  { %p1101_p11 = scmp.ne.s32.totalorder %s1219_s27, %s1100_s24  ;;  %p1106_p13 = scmp.lt.s32.totalorder %s1100_s24, %s1100_s24 }
  0x1d   :  { %p1107_p0 = por %p1106_p13, %p1105_p12 }
  0x1f   :  { %p1108_p1 = pnand %p1107_p0, %p1101_p11 }
  0x21   :  { %1111 = shalt.err (!%p1108_p1)
}
  0x22   :  { %30 = dma.hbm_to_vmem [thread:$0]  %s1407_s2, 1024, %s1219_s27, [#allocation3], %s1164_s13, %s1164_s13, %s1165_s14  }
  0x23   :  { %s1166_s26 = smov [#allocation7]   ;;  %s1112_s8 = scalar_lea.hbm %s1410_s5, 1024 }
  0x24   :  { %s50_s28 = sshll.u32 %s1166_s26, 4  ;;  %p1113_p2 = scmp.ne.s32.totalorder %s1410_s5, %s1112_s8  ;;  %s51_s28 = int_to_ptr.vmem [resolvable:$true] %s50_s28 }
  0x25   :  { %p1116_p3 = scmp.lt.u32.totalorder %s1112_s8, %s1410_s5 }
  0x27   :  { %p1118_p4 = pnand %p1116_p3, %p1113_p2 }
  0x29   :  { %1121 = shalt.err (!%p1118_p4)
}
  0x2a   :  { %s1122_s15 = scalar_lea.vmem %s51_s28, 1024  ;;  %p1127_p6 = scmp.lt.s32.totalorder %s51_s28, %s51_s28 }
  0x2b   :  { %p1123_p5 = scmp.ne.s32.totalorder %s51_s28, %s1122_s15  ;;  %p1128_p7 = scmp.lt.s32.totalorder %s1122_s15, %s1122_s15 }
  0x2d   :  { %p1129_p8 = por %p1128_p7, %p1127_p6 }
  0x2f   :  { %p1130_p9 = pnand %p1129_p8, %p1123_p5 }
  0x31   :  { %1133 = shalt.err (!%p1130_p9)
}
  0x32   :  { %56 = dma.hbm_to_vmem [thread:$0]  %s1410_s5, 1024, %s51_s28, [#allocation6], %s1164_s13, %s1164_s13, %s1165_s14  }
  0x33   :  { %1156 = dma.done.wait [#allocation3], 1024  }
  0x34   :  { %1157 = vsyncadd [#allocation3], 4294966272 }
  0x35   :  { %1158 = dma.done.wait [#allocation6], 2048  }
  0x36   :  { %1159 = vsyncadd [#allocation6], 4294965248  ;;  %v1167_v0 = vmov 0   ;;  %v69_v1 = vld [vmem:[%s1405_s0] sm:$0xff]  ;;  %v70_v2 = vld [vmem:[%s1405_s0 + $0x8] sm:$0xff]  ;;  %v1168_v5 = vmov 0.0  }
  0x37   :  { %1027 = vset.pattern.permute.xlu0 %v1167_v0  ;;  %v1028_v3 = vld [vmem:[#allocation5] sm:$0xff]   ;;  %942 = vmatprep.subr.bf16.mxu0 %v1168_v5  ;;  %v1030_v6 = vld [vmem:[#allocation5 + $0x8] sm:$0xff]   ;;  %v1032_v8 = vld [vmem:[#allocation5 + $0x10] sm:$0xff]   ;;  %vm1169_vm0 = vmmov 0   ;;  %v1170_v41 = vmov 683565275  }
  0x38   :  { %74 = vperm.xlu0 %1027, %v69_v1   ;;  %v1029_v4 = vld [vmem:[#allocation2] sm:$0xff]   ;;  %962 = vmatprep.subr.bf16.mxu1 %v1168_v5  ;;  %v1031_v7 = vld [vmem:[#allocation2 + $0x8] sm:$0xff]   ;;  %v1033_v9 = vld [vmem:[#allocation2 + $0x10] sm:$0xff]   ;;  %v1171_v45 = vmov 2475754826   ;;  %s1176_s20 = smov [#allocation8]  }
  0x39   :  { %943 = vmatpush3.bf16.msra.mxu0 %v1028_v3  ;;  %963 = vmatpush3.bf16.msra.mxu1 %v1029_v4  ;;  %v1034_v10 = vld [vmem:[#allocation5 + $0x18] sm:$0xff]   ;;  %v1036_v12 = vld [vmem:[#allocation5 + $0x20] sm:$0xff]   ;;  %v1038_v14 = vld [vmem:[#allocation5 + $0x28] sm:$0xff]   ;;  %v1172_v47 = vmov 2131351028   ;;  %s859_s21 = sshll.u32 %s1176_s20, 4  ;;  %s860_s21 = int_to_ptr.vmem [resolvable:$true] %s859_s21 }
  0x3a   :  { %944 = vmatprep.subr.bf16.mxu0 %v1168_v5  ;;  %964 = vmatprep.subr.bf16.mxu1 %v1168_v5  ;;  %v1035_v11 = vld [vmem:[#allocation2 + $0x18] sm:$0xff]   ;;  %v1037_v13 = vld [vmem:[#allocation2 + $0x20] sm:$0xff]   ;;  %v1039_v15 = vld [vmem:[#allocation2 + $0x28] sm:$0xff]   ;;  %v1173_v49 = vmov 2102212464   ;;  %s1134_s22 = scalar_lea.vmem %s860_s21, 256  ;;  %p1139_p11 = scmp.lt.s32.totalorder %s860_s21, %s860_s21 }
  0x3b   :  { %958 = vmatprep.mubr.msk.bf16.mxu0 %vm1169_vm0, %v1168_v5  ;;  %978 = vmatprep.mubr.msk.bf16.mxu1 %vm1169_vm0, %v1168_v5  ;;  %v1040_v16 = vld [vmem:[#allocation5 + $0x30] sm:$0xff]   ;;  %v1042_v18 = vld [vmem:[#allocation5 + $0x38] sm:$0xff]   ;;  %v872_v20 = vld [vmem:[%s1406_s1] ss:$0 sm:$0xff]  ;;  %v1174_v51 = vmov 920167782   ;;  %p1135_p10 = scmp.ne.s32.totalorder %s860_s21, %s1134_s22  ;;  %p1140_p12 = scmp.lt.s32.totalorder %s1134_s22, %s1134_s22 }
  0x3c   :  { %79 = vperm.xlu0 %1027, %v70_v2   ;;  %v1041_v17 = vld [vmem:[#allocation2 + $0x30] sm:$0xff]   ;;  %v1043_v19 = vld [vmem:[#allocation2 + $0x38] sm:$0xff]   ;;  %v1175_v58 = vmov 1326507024  }
  0x3d   :  { %945 = vmatpush3.bf16.msra.mxu0 %v1030_v6  ;;  %965 = vmatpush3.bf16.msra.mxu1 %v1031_v7  ;;  %p1141_p13 = por %p1140_p12, %p1139_p11 }
  0x3e   :  { %946 = vmatprep.subr.bf16.mxu0 %v1168_v5  ;;  %966 = vmatprep.subr.bf16.mxu1 %v1168_v5 }
  0x3f   :  { %p1142_p0 = pnand %p1141_p13, %p1135_p10 }
  0x41   :  { %947 = vmatpush3.bf16.msra.mxu0 %v1032_v8  ;;  %967 = vmatpush3.bf16.msra.mxu1 %v1033_v9 }
  0x42   :  { %948 = vmatprep.subr.bf16.mxu0 %v1168_v5  ;;  %968 = vmatprep.subr.bf16.mxu1 %v1168_v5 }
  0x45   :  { %949 = vmatpush3.bf16.msra.mxu0 %v1034_v10  ;;  %969 = vmatpush3.bf16.msra.mxu1 %v1035_v11 }
  0x46   :  { %950 = vmatprep.subr.bf16.mxu0 %v1168_v5  ;;  %970 = vmatprep.subr.bf16.mxu1 %v1168_v5 }
  0x49   :  { %951 = vmatpush3.bf16.msra.mxu0 %v1036_v12  ;;  %971 = vmatpush3.bf16.msra.mxu1 %v1037_v13 }
  0x4a   :  { %952 = vmatprep.subr.bf16.mxu0 %v1168_v5  ;;  %972 = vmatprep.subr.bf16.mxu1 %v1168_v5 }
  0x4d   :  { %953 = vmatpush3.bf16.msra.mxu0 %v1038_v14  ;;  %973 = vmatpush3.bf16.msra.mxu1 %v1039_v15 }
  0x4e   :  { %954 = vmatprep.subr.bf16.mxu0 %v1168_v5  ;;  %974 = vmatprep.subr.bf16.mxu1 %v1168_v5 }
  0x51   :  { %955 = vmatpush3.bf16.msra.mxu0 %v1040_v16  ;;  %975 = vmatpush3.bf16.msra.mxu1 %v1041_v17 }
  0x52   :  { %956 = vmatprep.subr.bf16.mxu0 %v1168_v5  ;;  %976 = vmatprep.subr.bf16.mxu1 %v1168_v5 }
  0x55   :  { %957 = vmatpush3.bf16.msra.mxu0 %v1042_v18  ;;  %977 = vmatpush3.bf16.msra.mxu1 %v1043_v19 }
  0x56   :  { %982 = vmatprep.subr.bf16.mxu0 %v1168_v5 }
  0xb7   :  { %v75_v21 = vpop.permute.xlu0 %74 }
  0xb8   :  { %v1301_v22 = vmul.f32 %v872_v20, %v75_v21 }
  0xba   :  { %v90_v23 = vand.u32 2147483647, %v1301_v22  ;;  %v93_v24 = vand.u32 2139095040, %v1301_v22  ;;  %vm92_vm15 = vcmp.lt.s32.totalorder %v1301_v22, 0 }
  0xbb   :  { %v80_v25 = vpop.permute.xlu0 %79 }
  0xbc   :  { %v94_v26 = vshrl.u32 %v93_v24, 23  ;;  %v1305_v27 = vmul.f32 %v872_v20, %v80_v25  ;;  %v97_v28 = vand.u32 8388607, %v90_v23 }
  0xbe   :  { %v873_v29 = vadd.s32 4294967169, %v94_v26  ;;  %v196_v30 = vand.u32 2139095040, %v1305_v27  ;;  %v98_v32 = vor.u32 8388608, %v97_v28  ;;  %v193_v34 = vand.u32 2147483647, %v1305_v27 }
  0xc0   :  { %v100_v31 = vadd.s32 1, %v873_v29  ;;  %v197_v33 = vshrl.u32 %v196_v30, 23  ;;  %v1311_v39 = vshll.u32 %v98_v32, 8  ;;  %v200_v43 = vand.u32 8388607, %v193_v34 }
  0xc2   :  { %vm101_vm1 = vcmp.gt.s32.totalorder %v100_v31, 0  ;;  %v877_v36 = vadd.s32 4294967169, %v197_v33  ;;  %v201_v10 = vor.u32 8388608, %v200_v43 }
  0xc3   :  { %v102_v35 = vsel %vm101_vm1, %v100_v31, 0  ;;  %vm1359_vm1 = vcmp.le.f32.partialorder %v90_v23, 0.7853982 }
  0xc4   :  { %v103_v37 = vshrl.u32 %v102_v35, 5  ;;  %v104_v38 = vand.u32 31, %v102_v35  ;;  %v203_v44 = vadd.s32 1, %v877_v36  ;;  %v241_v25 = vshll.u32 %v201_v10, 8 }
  0xc6   :  { %v105_v40 = vsub.s32 32, %v104_v38  ;;  %v107_v42 = vshll.u32 %v1170_v41, %v104_v38  ;;  %v110_v46 = vshll.u32 %v1171_v45, %v104_v38  ;;  %v113_v48 = vshll.u32 %v1172_v47, %v104_v38 }
  0xc7   :  { %v116_v50 = vshll.u32 %v1173_v49, %v104_v38  ;;  %v119_v52 = vshll.u32 %v1174_v51, %v104_v38  ;;  %vm122_vm2 = vcmp.lt.s32.totalorder %v103_v37, 1  ;;  %vm124_vm3 = vcmp.lt.s32.totalorder %v103_v37, 3 }
  0xc8   :  { %v108_v53 = vshrl.u32 %v1171_v45, %v105_v40  ;;  %v111_v54 = vshrl.u32 %v1172_v47, %v105_v40  ;;  %v114_v55 = vshrl.u32 %v1173_v49, %v105_v40  ;;  %v106_v56 = vshrl.u32 %v1170_v41, %v105_v40 }
  0xc9   :  { %v117_v57 = vshrl.u32 %v1174_v51, %v105_v40  ;;  %v120_v59 = vshrl.u32 %v1175_v58, %v105_v40  ;;  %vm204_vm4 = vcmp.gt.s32.totalorder %v203_v44, 0  ;;  %vm125_vm5 = vcmp.lt.s32.totalorder %v103_v37, 4 }
  0xca   :  { %v109_v60 = vor.u32 %v108_v53, %v107_v42  ;;  %v112_v61 = vor.u32 %v111_v54, %v110_v46  ;;  %v115_v62 = vor.u32 %v114_v55, %v113_v48  ;;  %v205_v1 = vsel %vm204_vm4, %v203_v44, 0 }
  0xcb   :  { %v118_v63 = vor.u32 %v117_v57, %v116_v50  ;;  %v121_v0 = vor.u32 %v120_v59, %v119_v52  ;;  %vm123_vm6 = vcmp.lt.s32.totalorder %v103_v37, 2  ;;  %v207_v13 = vand.u32 31, %v205_v1 }
  0xcc   :  { %v126_v2 = vsel %vm122_vm2, %v106_v56, %v109_v60  ;;  %v127_v3 = vsel %vm125_vm5, %v115_v62, 2102212464  ;;  %v130_v4 = vsel %vm122_vm2, %v109_v60, %v112_v61  ;;  %v134_v6 = vsel %vm122_vm2, %v112_v61, %v115_v62 }
  0xcd   :  { %v128_v7 = vsel %vm124_vm3, %v112_v61, %v127_v3  ;;  %v131_v8 = vsel %vm125_vm5, %v118_v63, 920167782  ;;  %v135_v9 = vsel %vm125_vm5, %v121_v0, 1326507024  ;;  %v206_v21 = vshrl.u32 %v205_v1, 5 }
  0xce   :  { %v132_v11 = vsel %vm124_vm3, %v115_v62, %v131_v8  ;;  %v136_v12 = vsel %vm124_vm3, %v118_v63, %v135_v9  ;;  %v129_v14 = vsel %vm123_vm6, %v126_v2, %v128_v7  ;;  %v208_v24 = vsub.s32 32, %v207_v13 }
  0xcf   :  { %v133_v15 = vsel %vm123_vm6, %v130_v4, %v132_v11  ;;  %v137_v16 = vsel %vm123_vm6, %v134_v6, %v136_v12  ;;  %v145_v26 = vmul.u32 %v1311_v39, %v129_v14  ;;  %v210_v28 = vshll.u32 %v1170_v41, %v207_v13 }
  0xd0   :  { %v1324_v17 = vmul.u32.u64.low %v1311_v39, %v137_v16  ;;  %v1325_v18 = vmul.u32.u64.high %v1311_v39, %v137_v16, %v1324_v17  ;;  %v1328_v19 = vmul.u32.u64.low %v1311_v39, %v133_v15  ;;  %v1329_v20 = vmul.u32.u64.high %v1311_v39, %v133_v15, %v1328_v19 }
  0xd1   :  { %v213_v29 = vshll.u32 %v1171_v45, %v207_v13  ;;  %v216_v30 = vshll.u32 %v1172_v47, %v207_v13  ;;  %v211_v31 = vshrl.u32 %v1171_v45, %v208_v24  ;;  %v214_v32 = vshrl.u32 %v1172_v47, %v208_v24 }
  0xd2   :  { %v217_v33 = vshrl.u32 %v1173_v49, %v208_v24  ;;  %v219_v35 = vshll.u32 %v1173_v49, %v207_v13  ;;  %vm147_vm7 = vc.u32 %v1325_v18, %v1328_v19  ;;  %v148_v36 = vadd.s32 1, %v1329_v20 }
  0xd3   :  { %v220_v37 = vshrl.u32 %v1174_v51, %v208_v24  ;;  %v222_v38 = vshll.u32 %v1174_v51, %v207_v13  ;;  %v212_v40 = vor.u32 %v211_v31, %v210_v28  ;;  %v215_v42 = vor.u32 %v214_v32, %v213_v29 }
  0xd4   :  { %v218_v43 = vor.u32 %v217_v33, %v216_v30  ;;  %v223_v44 = vshrl.u32 %v1175_v58, %v208_v24  ;;  %v149_v39 = vsel %vm147_vm7, %v148_v36, %v1329_v20  ;;  %vm225_vm8 = vcmp.lt.s32.totalorder %v206_v21, 1 }
  0xd5   :  { %v221_v46 = vor.u32 %v220_v37, %v219_v35  ;;  %vm228_vm9 = vcmp.lt.s32.totalorder %v206_v21, 4  ;;  %v150_v45 = vadd.s32 %v149_v39, %v145_v26  ;;  %vm227_vm10 = vcmp.lt.s32.totalorder %v206_v21, 3 }
  0xd6   :  { %v224_v47 = vor.u32 %v223_v44, %v222_v38  ;;  %v230_v48 = vsel %vm228_vm9, %v218_v43, 2102212464  ;;  %v209_v49 = vshrl.u32 %v1170_v41, %v208_v24  ;;  %v233_v50 = vsel %vm225_vm8, %v212_v40, %v215_v42 }
  0xd7   :  { %v234_v52 = vsel %vm228_vm9, %v221_v46, 920167782  ;;  %v237_v53 = vsel %vm225_vm8, %v215_v42, %v218_v43  ;;  %v151_v54 = vadd.s32 536870912, %v150_v45  ;;  %vm226_vm11 = vcmp.lt.s32.totalorder %v206_v21, 2 }
  0xd8   :  { %v235_v51 = vsel %vm227_vm10, %v218_v43, %v234_v52  ;;  %v238_v55 = vsel %vm228_vm9, %v224_v47, 1326507024  ;;  %v229_v56 = vsel %vm225_vm8, %v209_v49, %v212_v40  ;;  %v231_v57 = vsel %vm227_vm10, %v215_v42, %v230_v48 }
  0xd9   :  { %v236_v58 = vsel %vm226_vm11, %v233_v50, %v235_v51  ;;  %v239_v59 = vsel %vm227_vm10, %v221_v46, %v238_v55  ;;  %v1339_v60 = vshrl.u32 %v151_v54, 30  ;;  %v232_v2 = vsel %vm226_vm11, %v229_v56, %v231_v57 }
  0xda   :  { %v240_v61 = vsel %vm226_vm11, %v237_v53, %v239_v59  ;;  %v1341_v62 = vmul.u32.u64.low %v241_v25, %v236_v58  ;;  %v1342_v63 = vmul.u32.u64.high %v241_v25, %v236_v58, %v1341_v62  ;;  %v248_v6 = vmul.u32 %v241_v25, %v232_v2 }
  0xdb   :  { %v1344_v0 = vmul.u32.u64.low %v241_v25, %v240_v61  ;;  %v1345_v1 = vmul.u32.u64.high %v241_v25, %v240_v61, %v1344_v0  ;;  %v153_v41 = vshll.u32 %v1339_v60, 30  ;;  %v146_v20 = vadd.s32 %v1328_v19, %v1325_v18 }
  0xdc   :  { %v251_v4 = vadd.s32 1, %v1342_v63  ;;  %v176_v54 = vsub.s32 4, %v1339_v60  ;;  %vm195_vm2 = vcmp.lt.s32.totalorder %v1305_v27, 0  ;;  %vm194_vm3 = vcmp.le.f32.partialorder %v193_v34, 0.7853982 }
  0xdd   :  { %v154_v3 = vsub.s32 %v150_v45, %v153_v41  ;;  %vm250_vm12 = vc.u32 %v1345_v1, %v1341_v62  ;;  %v249_v43 = vadd.s32 %v1341_v62, %v1345_v1 }
  0xde   :  { %v252_v8 = vsel %vm250_vm12, %v251_v4, %v1342_v63  ;;  %v177_v23 = vsel %vm92_vm15, %v176_v54, %v1339_v60 }
  0xdf   :  { %v156_v7 = vsub.s32 0, %v154_v3  ;;  %v253_v9 = vadd.s32 %v252_v8, %v248_v6  ;;  %v179_v61 = vsel %vm1359_vm1, 0, %v177_v23 }
  0xe0   :  { %v389_v1 = vadd.s32 3, %v179_v61  ;;  %v183_v4 = vand.u32 3, %v179_v61 }
  0xe1   :  { %v874_v10 = vmin.u32 %v156_v7, %v154_v3  ;;  %v254_v11 = vadd.s32 536870912, %v253_v9 }
  0xe2   :  { %vm185_vm6 = vcmp.eq.s32.totalorder %v183_v4, 0  ;;  %vm188_vm7 = vcmp.eq.s32.totalorder %v183_v4, 2  ;;  %vm184_vm9 = vcmp.lt.s32.totalorder %v183_v4, 2 }
  0xe3   :  { %v158_v12 = vclz %v874_v10  ;;  %v255_v13 = vshrl.u32 %v254_v11, 30 }
  0xe5   :  { %v875_v14 = vadd.s32 4294967294, %v158_v12  ;;  %v256_v15 = vshll.u32 %v255_v13, 30  ;;  %v279_v57 = vsub.s32 4, %v255_v13 }
  0xe7   :  { %vm876_vm13 = vcmp.lt.s32.totalorder %v875_v14, 0  ;;  %v257_v17 = vsub.s32 %v253_v9, %v256_v15  ;;  %v280_v62 = vsel %vm195_vm2, %v279_v57, %v255_v13 }
  0xe8   :  { %v161_v16 = vsel %vm876_vm13, 0, %v875_v14  ;;  %v282_v0 = vsel %vm194_vm3, 0, %v280_v62 }
  0xe9   :  { %v162_v21 = vsub.s32 32, %v161_v16  ;;  %v166_v24 = vsub.s32 4294967266, %v161_v16  ;;  %v259_v25 = vsub.s32 0, %v257_v17  ;;  %v163_v26 = vshll.u32 %v154_v3, %v161_v16 }
  0xea   :  { %v493_v60 = vadd.s32 3, %v282_v0  ;;  %v390_v3 = vand.u32 3, %v389_v1  ;;  %v286_v8 = vand.u32 3, %v282_v0 }
  0xeb   :  { %v164_v28 = vshrl.u32 %v146_v20, %v162_v21  ;;  %v167_v29 = vadd.s32 127, %v166_v24  ;;  %v878_v30 = vmin.u32 %v259_v25, %v257_v17 }
  0xec   :  { %v494_v34 = vand.u32 3, %v493_v60  ;;  %vm392_vm4 = vcmp.eq.s32.totalorder %v390_v3, 0  ;;  %vm395_vm5 = vcmp.eq.s32.totalorder %v390_v3, 2  ;;  %vm391_vm8 = vcmp.lt.s32.totalorder %v390_v3, 2 }
  0xed   :  { %v165_v31 = vor.u32 %v164_v28, %v163_v26  ;;  %v168_v32 = vshll.u32 %v167_v29, 23  ;;  %v261_v33 = vclz %v878_v30  ;;  %vm288_vm10 = vcmp.eq.s32.totalorder %v286_v8, 0 }
  0xee   :  { %vm496_vm11 = vcmp.eq.s32.totalorder %v494_v34, 0  ;;  %vm499_vm12 = vcmp.eq.s32.totalorder %v494_v34, 2  ;;  %vm291_vm13 = vcmp.eq.s32.totalorder %v286_v8, 2 }
  0xef   :  { %v169_v35 = vor.u32 4788187, %v168_v32  ;;  %v879_v36 = vadd.s32 4294967294, %v261_v33  ;;  %v172_v38 = vcvt.s32.f32 %v165_v31 }
  0xf1   :  { %v170_v37 = vand.u32 2147483647, %v169_v35  ;;  %vm880_vm14 = vcmp.lt.s32.totalorder %v879_v36, 0 }
  0xf2   :  { %v264_v42 = vsel %vm880_vm14, 0, %v879_v36  ;;  %vm495_vm14 = vcmp.lt.s32.totalorder %v494_v34, 2 }
  0xf3   :  { %v173_v40 = vmul.f32 %v172_v38, %v170_v37  ;;  %v265_v18 = vsub.s32 32, %v264_v42  ;;  %v269_v19 = vsub.s32 4294967266, %v264_v42  ;;  %v266_v39 = vshll.u32 %v257_v17, %v264_v42  ;;  %v1044_v37 = vld [vmem:[#allocation7] sm:$0xff]   ;;  %v1047_v38 = vld [vmem:[#allocation7 + $0x18] sm:$0xff]   ;;  %v1049_v42 = vld [vmem:[#allocation7 + $0x28] sm:$0xff]  }
  0xf5   :  { %v174_v44 = vxor.u32 2147483648, %v173_v40  ;;  %v267_v46 = vshrl.u32 %v249_v43, %v265_v18  ;;  %v270_v45 = vadd.s32 127, %v269_v19  ;;  %v1050_v43 = vld [vmem:[#allocation7 + $0x30] sm:$0xff]   ;;  %v1051_v18 = vld [vmem:[#allocation7 + $0x38] sm:$0xff]  }
  0xf7   :  { %v175_v47 = vsel %vm92_vm15, %v174_v44, %v173_v40  ;;  %v268_v49 = vor.u32 %v267_v46, %v266_v39  ;;  %v271_v50 = vshll.u32 %v270_v45, 23  ;;  %vm287_vm15 = vcmp.lt.s32.totalorder %v286_v8, 2  ;;  %v1048_v40 = vld [vmem:[#allocation7 + $0x20] sm:$0xff]  }
  0xf8   :  { %v178_v52 = vsel %vm1359_vm1, %v1301_v22, %v175_v47  ;;  %vm182_vm1 = vweird.f32 %v1301_v22  ;;  %v1045_v22 = vld [vmem:[#allocation7 + $0x8] sm:$0xff]   ;;  %v905_v39 = vld [vmem:[%s1409_s4] ss:$0 sm:$0xff] }
  0xf9   :  { %v272_v53 = vor.u32 4788187, %v271_v50  ;;  %1052 = vcosq.f32 %v178_v52  ;;  %v275_v55 = vcvt.s32.f32 %v268_v49 }
  0xfa   :  { %1054 = vsinq.f32 %v178_v52 }
  0xfb   :  { %v273_v51 = vand.u32 2147483647, %v272_v53 }
  0xfd   :  { %v276_v56 = vmul.f32 %v275_v55, %v273_v51 }
  0xff   :  { %v277_v58 = vxor.u32 2147483648, %v276_v56 }
 0x101   :  { %v278_v59 = vsel %vm195_vm2, %v277_v58, %v276_v56  ;;  %vm285_vm2 = vweird.f32 %v1305_v27 }
 0x102   :  { %v281_v63 = vsel %vm194_vm3, %v1305_v27, %v278_v59  ;;  %v1046_v27 = vld [vmem:[#allocation7 + $0x10] sm:$0xff]  }
 0x103   :  { %1056 = vcosq.f32 %v281_v63  ;;  %v1053_v41 = vpop.eup %1052 }
 0x104   :  { %1058 = vsinq.f32 %v281_v63  ;;  %v1055_v2 = vpop.eup %1054  ;;  %v189_v7 = vxor.u32 2147483648, %v1053_v41 }
 0x105   :  { %v186_v6 = vxor.u32 2147483648, %v1055_v2 }
 0x106   :  { %v397_v11 = vsel %vm395_vm5, %v189_v7, %v1055_v2  ;;  %v190_v13 = vsel %vm188_vm7, %v189_v7, %v1055_v2  ;;  %v906_v2 = vld [vmem:[%s1411_s6] ss:$0 sm:$0xff] }
 0x107   :  { %v394_v10 = vsel %vm392_vm4, %v1053_v41, %v186_v6  ;;  %v187_v12 = vsel %vm185_vm6, %v1053_v41, %v186_v6 }
 0x108   :  { %v398_v17 = vsel %vm391_vm8, %v394_v10, %v397_v11  ;;  %v191_v21 = vsel %vm184_vm9, %v187_v12, %v190_v13 }
 0x109   :  { %v399_v30 = vsel %vm182_vm1, nan, %v398_v17  ;;  %v192_v32 = vsel %vm182_vm1, nan, %v191_v21 }
 0x10d   :  { %v1057_v9 = vpop.eup %1056 }
 0x10e   :  { %v1059_v14 = vpop.eup %1058  ;;  %v292_v15 = vxor.u32 2147483648, %v1057_v9 }
 0x10f   :  { %v289_v16 = vxor.u32 2147483648, %v1059_v14 }
 0x110   :  { %v501_v20 = vsel %vm499_vm12, %v292_v15, %v1059_v14  ;;  %v293_v24 = vsel %vm291_vm13, %v292_v15, %v1059_v14 }
 0x111   :  { %v498_v25 = vsel %vm496_vm11, %v1057_v9, %v289_v16  ;;  %v290_v26 = vsel %vm288_vm10, %v1057_v9, %v289_v16 }
 0x112   :  { %v502_v28 = vsel %vm495_vm14, %v498_v25, %v501_v20  ;;  %v294_v29 = vsel %vm287_vm15, %v290_v26, %v293_v24 }
 0x113   :  { %v503_v31 = vsel %vm285_vm2, nan, %v502_v28  ;;  %v295_v33 = vsel %vm285_vm2, nan, %v294_v29 }
 0x114   :  { %v521_v35 = vpack.c.bf16 %v503_v31, %v399_v30  ;;  %v504_v36 = vpack.c.bf16 %v295_v33, %v192_v32 }
 0x116   :  { %959 = vmatmul.mubr.bf16.vlgmr.msra.gmra.mrb[0].mxu0 %v521_v35  ;;  %979 = vmatmul.mubr.bf16.vlgmr.msra.gmra.mrb[0].mxu1 %v504_v36 }
 0x117   :  { %998 = vmatprep.mubr.msk.bf16.mxu0 %vm1169_vm0, %v1168_v5  ;;  %983 = vmatpush3.bf16.msra.mxu0 %v1044_v37 }
 0x118   :  { %984 = vmatprep.subr.bf16.mxu0 %v1168_v5 }
 0x11b   :  { %985 = vmatpush3.bf16.msra.mxu0 %v1045_v22 }
 0x11c   :  { %986 = vmatprep.subr.bf16.mxu0 %v1168_v5 }
 0x11f   :  { %987 = vmatpush3.bf16.msra.mxu0 %v1046_v27 }
 0x120   :  { %988 = vmatprep.subr.bf16.mxu0 %v1168_v5 }
 0x123   :  { %989 = vmatpush3.bf16.msra.mxu0 %v1047_v38 }
 0x124   :  { %990 = vmatprep.subr.bf16.mxu0 %v1168_v5 }
 0x127   :  { %991 = vmatpush3.bf16.msra.mxu0 %v1048_v40 }
 0x128   :  { %992 = vmatprep.subr.bf16.mxu0 %v1168_v5 }
 0x12b   :  { %993 = vmatpush3.bf16.msra.mxu0 %v1049_v42 }
 0x12c   :  { %994 = vmatprep.subr.bf16.mxu0 %v1168_v5 }
 0x12f   :  { %995 = vmatpush3.bf16.msra.mxu0 %v1050_v43 }
 0x130   :  { %996 = vmatprep.subr.bf16.mxu0 %v1168_v5 }
 0x133   :  { %997 = vmatpush3.bf16.msra.mxu0 %v1051_v18 }
 0x1e9   :  { %v620_v19 = vpop.f32.mrb[0].mxu0  ;;  %v709_v44 = vpop.f32.mrb[0].mxu1 }
 0x1ea   :  { %v710_v46 = vadd.f32 %v709_v44, %v620_v19  ;;  %v960_v45 = vpop.f32.mrb[1].mxu0  ;;  %v980_v47 = vpop.f32.mrb[1].mxu1 }
 0x1eb   :  { %v623_v48 = vpop.f32.mrb[2].mxu0  ;;  %v712_v49 = vpop.f32.mrb[2].mxu1 }
 0x1ec   :  { %v723_v50 = vadd.f32 %v905_v39, %v710_v46  ;;  %v713_v52 = vadd.f32 %v712_v49, %v623_v48  ;;  %v961_v53 = vpop.f32.mrb[3].mxu0  ;;  %v981_v54 = vpop.f32.mrb[3].mxu1 }
 0x1ee   :  { %v725_v51 = vsub.f32 0.0, %v723_v50  ;;  %v724_v55 = vadd.f32 %v905_v39, %v713_v52 }
 0x1f0   :  { %v727_v5 = vmul.f32 1.442695, %v725_v51  ;;  %v726_v56 = vsub.f32 0.0, %v724_v55 }
 0x1f2   :  { %1060 = vpow2.f32 %v727_v5  ;;  %v729_v57 = vmul.f32 1.442695, %v726_v56 }
 0x1f4   :  { %1062 = vpow2.f32 %v729_v57 }
 0x1fc   :  { %v1061_v23 = vpop.eup %1060 }
 0x1fd   :  { %v731_v58 = vadd.f32 1.0, %v1061_v23 }
 0x1fe   :  { %v1063_v59 = vpop.eup %1062 }
 0x1ff   :  { %1064 = vrcp.f32 %v731_v58  ;;  %v732_v61 = vadd.f32 1.0, %v1063_v59 }
 0x201   :  { %1066 = vrcp.f32 %v732_v61 }
 0x209   :  { %v1065_v62 = vpop.eup %1064 }
 0x20a   :  { %v737_v0 = vmul.f32 %v1065_v62, %v723_v50 }
 0x20b   :  { %v1067_v63 = vpop.eup %1066 }
 0x20c   :  { %v738_v1 = vmul.f32 %v1067_v63, %v724_v55 }
 0x20e   :  { %v739_v41 = vpack.c.bf16 %v738_v1, %v737_v0 }
 0x210   :  { %999 = vmatmul.mubr.bf16.vlgmr.msra.gmra.mrb[4].mxu0 %v739_v41 }
 0x2e3   :  { %v845_v60 = vpop.f32.mrb[4].mxu0 }
 0x2e4   :  { %v846_v3 = vadd.f32 %v906_v2, %v845_v60  ;;  %v1000_v4 = vpop.f32.mrb[5].mxu0 }
 0x2e5   :  { %v848_v6 = vpop.f32.mrb[6].mxu0 }
 0x2e6   :  { %852 = vst [vmem:[#allocation8] sm:$0xff] %v846_v3  ;;  %v849_v7 = vadd.f32 %v906_v2, %v848_v6  ;;  %v1001_v8 = vpop.f32.mrb[7].mxu0 }
 0x2e8   :  { %853 = vst [vmem:[#allocation8 + $0x8] sm:$0xff] %v849_v7 }
 0x2e9   :  { %1145 = shalt.err (!%p1142_p0)
}
 0x2ea   :  { %s1146_s24 = scalar_lea.hbm %s1412_s7, 256 }
 0x2eb   :  { %p1147_p1 = scmp.ne.s32.totalorder %s1412_s7, %s1146_s24  ;;  %p1150_p2 = scmp.lt.u32.totalorder %s1146_s24, %s1412_s7 }
 0x2ed   :  { %p1152_p3 = pnand %p1150_p2, %p1147_p1 }
 0x2ef   :  { %1155 = shalt.err (!%p1152_p3)
}
 0x2f0   :  { %s1177_s29 = smov 128   ;;  %s1178_s30 = smov 8  }
 0x2f1   :  { %865 = dma.vmem_to_hbm [thread:$0]  %s860_s21, 256, %s1412_s7, [#allocation4], %s1177_s29, %s1177_s29, %s1178_s30  }
 0x2f2   :  { %1160 = dma.done.wait [#allocation4], 256  }
 0x2f3   :  { %1161 = vsyncadd [#allocation4], 4294967040 }
 0x2f4   :  { %869 = vsyncpa [#allocation3], 1 }
 0x2f5   :  { %870 = vsyncpa [#allocation6], 1 }
 0x2f6   :  { %871 = vsyncpa [#allocation4], 1 }

</bundles_post_ra>
